<compile_context>
chip_gen: v6e
topology: v6e:2x2x1
jax: 0.10.0
libtpu: 0.0.40
codegen_flags: <defaults>
</compile_context>

<pallas_src>
import functools

import jax
import jax.numpy as jnp
from jax.experimental import pallas as pl
from jax.experimental.pallas import tpu as pltpu

LANES = 128
_MIN_PALLAS_ELEMS = 16384   # below this, plain XLA beats kernel-launch overhead


def _device_kind() -> str:
    try:
        return jax.devices()[0].device_kind.lower()
    except Exception:
        return ""


def _pick_tile_rows() -> int:
    """Streaming tile height (rows of 128 f32 lanes), per TPU generation."""
    kind = _device_kind()
    if ("v6" in kind) or ("v7" in kind) or ("7x" in kind) or ("trillium" in kind):
        return 8192   # 4 MiB/input/step; 16 MiB double-buffered < 32 MiB default
    return 4096       # v5e & unknown: 8 MiB double-buffered < 16 MiB default


def _num_tensorcores_per_chip() -> int:
    """2 TensorCores per chip on v7x; 1 on v5e/v6e."""
    kind = _device_kind()
    return 2 if (("v7" in kind) or ("7x" in kind)) else 1


def _l1_partial_kernel(fake_ref, real_ref, out_ref, acc_ref, *,
                       rows_valid, steps_per_core, tile_rows, acc_rows,
                       mask_tail):
    """Accumulates per-(sublane, lane) partial sums of |fake - real|."""
    c = pl.program_id(0)   # core-split axis (size 1 except on v7x)
    i = pl.program_id(1)   # streaming / reduction axis

    @pl.when(i == 0)
    def _init():
        acc_ref[...] = jnp.zeros_like(acc_ref)

    diff = jnp.abs(fake_ref[...].astype(jnp.float32)
                   - real_ref[...].astype(jnp.float32))

    def _accumulate(d):
        if acc_rows == 8:
            # Pure vreg (VPU) adds; the 8->1 sublane fold is deferred to the
            # JAX epilogue instead of hitting the XLU every grid step.
            acc_ref[...] += d.reshape(-1, 8, LANES).sum(axis=0)
        else:
            acc_ref[...] += d.sum(axis=0, keepdims=True)

    if mask_tail:
        row_base = (c * steps_per_core + i) * tile_rows
        is_boundary = (row_base + tile_rows) > rows_valid

        # Only the ragged last tile / duplicated clamped tile pays for the
        # iota + compare + select; interior tiles take the cheap path.
        @pl.when(jnp.logical_not(is_boundary))
        def _interior():
            _accumulate(diff)

        @pl.when(is_boundary)
        def _boundary():
            row_ids = row_base + jax.lax.broadcasted_iota(
                jnp.int32, (tile_rows, LANES), 0)
            _accumulate(jnp.where(row_ids < rows_valid, diff, 0.0))
    else:
        _accumulate(diff)

    @pl.when(i == pl.num_programs(1) - 1)
    def _fin():
        out_ref[...] = acc_ref[...]


def _l1_mean_pallas(fake, real):
    """mean(|fake - real|) via a Pallas HBM-streaming reduction.

    Caller guarantees fake.size % 128 == 0, so the (rows, 128) lane-dense view
    is a free reshape (no pad / slice copy in HBM).
    """
    n_elem = fake.size
    rows = n_elem // LANES
    f2 = fake.reshape(rows, LANES)
    r2 = real.reshape(rows, LANES)

    # Shrink the block to the slab for small inputs -> single step, no mask.
    tile_rows = min(_pick_tile_rows(), rows)
    acc_rows = 8 if tile_rows % 8 == 0 else 1

    total_blocks = -(-rows // tile_rows)
    # Split the HBM stream across TensorCores only on 2-TC chips (v7x);
    # on single-TC chips the split is pure overhead.
    n_split = 2 if (_num_tensorcores_per_chip() == 2 and total_blocks >= 2) else 1
    steps = -(-total_blocks // n_split)
    last_block = total_blocks - 1
    # Mask only needed for a ragged last tile or a duplicated clamped tile on
    # the second core; compiled out entirely when tiles divide evenly.
    mask_tail = (rows % tile_rows != 0) or (n_split * steps != total_blocks)

    kernel = functools.partial(
        _l1_partial_kernel,
        rows_valid=rows,
        steps_per_core=steps,
        tile_rows=tile_rows,
        acc_rows=acc_rows,
        mask_tail=mask_tail,
    )

    # Clamp the block index so the DMA never starts past the array; any
    # duplicated tile is fully zeroed by the (gated) in-kernel mask.
    in_spec = pl.BlockSpec(
        (tile_rows, LANES),
        lambda c, i: (jnp.minimum(c * steps + i, last_block), 0))

    if n_split == 2:
        # v7x: plain "parallel" does not reliably change core assignment;
        # CORE_PARALLEL makes the 2-way HBM-stream split real.
        dim_sem = (pltpu.CORE_PARALLEL, pltpu.ARBITRARY)
    else:
        dim_sem = ("arbitrary", "arbitrary")

    itemsize = jnp.dtype(fake.dtype).itemsize
    cost = pl.CostEstimate(
        flops=3 * n_elem,                 # sub + abs + add per element
        transcendentals=0,
        bytes_accessed=2 * n_elem * itemsize + n_split * acc_rows * LANES * 4,
    )

    partials = pl.pallas_call(
        kernel,
        out_shape=jax.ShapeDtypeStruct((n_split * acc_rows, LANES), jnp.float32),
        grid_spec=pltpu.PrefetchScalarGridSpec(
            num_scalar_prefetch=0,
            grid=(n_split, steps),
            in_specs=[in_spec, in_spec],
            out_specs=pl.BlockSpec((acc_rows, LANES), lambda c, i: (c, 0)),
            scratch_shapes=[pltpu.VMEM((acc_rows, LANES), jnp.float32)],
        ),
        compiler_params=pltpu.CompilerParams(
            dimension_semantics=dim_sem,
            # 2 inputs x 2 buffers x (2 or 4 MiB) stays under every
            # generation's default scoped-VMEM limit -> no override needed.
        ),
        cost_estimate=cost,
    )(f2, r2)

    # Tiny epilogue reduce (<= 2*8*128 numbers) in plain JAX.
    return jnp.sum(partials) / jnp.float32(n_elem)


@functools.partial(jax.jit, static_argnames=("alpha",))
def pixelwise_loss_l1(fake, real, alpha=1.0):
    """JAX/Pallas equivalent of PixelwiseLossL1(alpha)(fake, real).

    Matches torch.nn.L1Loss default 'mean' reduction, scaled by alpha.
    Returns a scalar float32.
    """
    assert fake.shape == real.shape, "L1Loss requires matching shapes"
    n = fake.size
    if n < _MIN_PALLAS_ELEMS or (n % LANES) != 0:
        # Tiny tensors: launch overhead dominates.
        # Non-multiple-of-128 sizes: a lane-dense repack (pad/slice) would
        # materialize a full extra HBM copy of both inputs, costing more than
        # XLA's fused read-once reduction, so use the fused path instead.
        mean = jnp.mean(jnp.abs(fake.astype(jnp.float32)
                                - real.astype(jnp.float32)))
    else:
        mean = _l1_mean_pallas(fake, real)
    return jnp.float32(alpha) * mean


if __name__ == "__main__":
    key = jax.random.PRNGKey(0)
    k1, k2 = jax.random.split(key)

    def _ref(f, r, a):
        return a * jnp.mean(jnp.abs(f.astype(jnp.float32) - r.astype(jnp.float32)))

    # 1) Primary test: Pallas path, single full-slab tile (2*4*64*64 = 32768).
    fake = jax.random.normal(k1, (2, 4, 64, 64), dtype=jnp.float32)
    real = jax.random.normal(k2, (2, 4, 64, 64), dtype=jnp.float32)
    loss = jax.block_until_ready(pixelwise_loss_l1(fake, real, alpha=1.0))
    assert jnp.allclose(loss, _ref(fake, real, 1.0), rtol=1e-5, atol=1e-6), loss

    # 2) Multi-tile path: streaming accumulation (and 2-TC split on v7x).
    f_m = jax.random.normal(k1, (2, 4, 512, 512), dtype=jnp.float32)
    r_m = jax.random.normal(k2, (2, 4, 512, 512), dtype=jnp.float32)
    loss_m = jax.block_until_ready(pixelwise_loss_l1(f_m, r_m, alpha=2.0))
    assert jnp.allclose(loss_m, _ref(f_m, r_m, 2.0), rtol=1e-4, atol=1e-6), loss_m

    # 3) Ragged last tile: exercises the gated boundary mask (8320 rows).
    f_g = jax.random.normal(k1, (1, 1, 8320, 128), dtype=jnp.float32)
    r_g = jax.random.normal(k2, (1, 1, 8320, 128), dtype=jnp.float32)
    loss_g = jax.block_until_ready(pixelwise_loss_l1(f_g, r_g, alpha=1.5))
    assert jnp.allclose(loss_g, _ref(f_g, r_g, 1.5), rtol=1e-4, atol=1e-6), loss_g

    # 4) Small slab with row count not divisible by 8 (acc_rows == 1 path).
    f_o = jax.random.normal(k1, (1, 1, 129, 128), dtype=jnp.float32)
    r_o = jax.random.normal(k2, (1, 1, 129, 128), dtype=jnp.float32)
    loss_o = jax.block_until_ready(pixelwise_loss_l1(f_o, r_o, alpha=0.75))
    assert jnp.allclose(loss_o, _ref(f_o, r_o, 0.75), rtol=1e-5, atol=1e-6), loss_o

    # 5) Tiny-shape path (plain jnp fallback; same module semantics).
    f_s = jax.random.normal(k1, (2, 4, 16, 16), dtype=jnp.float32)
    r_s = jax.random.normal(k2, (2, 4, 16, 16), dtype=jnp.float32)
    loss_s = jax.block_until_ready(pixelwise_loss_l1(f_s, r_s, alpha=0.5))
    assert jnp.allclose(loss_s, _ref(f_s, r_s, 0.5), rtol=1e-5, atol=1e-6), loss_s

    # 6) Non-multiple-of-128 element count: fused XLA path (no padded copy).
    f_n = jax.random.normal(k1, (5, 7, 31, 19), dtype=jnp.float32)
    r_n = jax.random.normal(k2, (5, 7, 31, 19), dtype=jnp.float32)
    loss_n = jax.block_until_ready(pixelwise_loss_l1(f_n, r_n, alpha=1.0))
    assert jnp.allclose(loss_n, _ref(f_n, r_n, 1.0), rtol=1e-5, atol=1e-6), loss_n

    print("KERNEL_OK")
</pallas_src>

<mosaic_0001>
module attributes {stable_mosaic.version = 11 : i64} {
  func.func @_l1_partial_kernel(%arg0: i32, %arg1: i32, %arg2: memref<256x128xf32, #tpu.memory_space<vmem>>, %arg3: memref<256x128xf32, #tpu.memory_space<vmem>>, %arg4: memref<8x128xf32, #tpu.memory_space<vmem>>, %arg5: memref<8x128xf32, #tpu.memory_space<vmem>>) attributes {dimension_semantics = [#tpu.dimension_semantics<arbitrary>, #tpu.dimension_semantics<arbitrary>], iteration_bounds = array<i64: 1, 1>, scalar_prefetch = 0 : i64, scratch_operands = 1 : i64, tpu.core_type = #tpu.core_type<tc>, window_params = [{transform_indices = @transform_0, window_bounds = array<i64: 256, 128>}, {transform_indices = @transform_1, window_bounds = array<i64: 256, 128>}, {transform_indices = @transform_2, window_bounds = array<i64: 8, 128>}]} {
    %c0_i32 = arith.constant 0 : i32
    %0 = arith.cmpi eq, %arg1, %c0_i32 : i32
    %1 = arith.extui %0 : i1 to i32
    %c0_i32_0 = arith.constant 0 : i32
    %2 = arith.cmpi ne, %1, %c0_i32_0 : i32
    scf.if %2 {
      %cst_10 = arith.constant 0.000000e+00 : f32
      %15 = vector.broadcast %cst_10 : f32 to vector<8x128xf32>
      %c0_11 = arith.constant 0 : index
      %c0_12 = arith.constant 0 : index
      %16 = vector.load %arg5[%c0_11, %c0_12] : memref<8x128xf32, #tpu.memory_space<vmem>>, vector<8x128xf32>
      tpu.vector_store %arg5[%c0_11, %c0_12], %15 {strides = array<i32>} : memref<8x128xf32, #tpu.memory_space<vmem>>, vector<8x128xf32>,
    } else {
    }
    %c0 = arith.constant 0 : index
    %c0_1 = arith.constant 0 : index
    %3 = vector.load %arg2[%c0, %c0_1] : memref<256x128xf32, #tpu.memory_space<vmem>>, vector<256x128xf32>
    %c0_2 = arith.constant 0 : index
    %c0_3 = arith.constant 0 : index
    %4 = vector.load %arg3[%c0_2, %c0_3] : memref<256x128xf32, #tpu.memory_space<vmem>>, vector<256x128xf32>
    %5 = arith.subf %3, %4 : vector<256x128xf32>
    %6 = math.absf %5 : vector<256x128xf32>
    %c0_4 = arith.constant 0 : index
    %c0_5 = arith.constant 0 : index
    %7 = vector.load %arg5[%c0_4, %c0_5] : memref<8x128xf32, #tpu.memory_space<vmem>>, vector<8x128xf32>
    %8 = vector.shape_cast %6 : vector<256x128xf32> to vector<32x8x128xf32>
    %cst = arith.constant dense<0.000000e+00> : vector<8x128xf32>
    %9 = vector.multi_reduction <add>, %8, %cst [0] : vector<32x8x128xf32> to vector<8x128xf32>
    %10 = arith.addf %7, %9 : vector<8x128xf32>
    %c0_6 = arith.constant 0 : index
    %c0_7 = arith.constant 0 : index
    %11 = vector.load %arg5[%c0_6, %c0_7] : memref<8x128xf32, #tpu.memory_space<vmem>>, vector<8x128xf32>
    tpu.vector_store %arg5[%c0_6, %c0_7], %10 {strides = array<i32>} : memref<8x128xf32, #tpu.memory_space<vmem>>, vector<8x128xf32>,
    %c0_i32_8 = arith.constant 0 : i32
    %12 = arith.cmpi eq, %arg1, %c0_i32_8 : i32
    %13 = arith.extui %12 : i1 to i32
    %c0_i32_9 = arith.constant 0 : i32
    %14 = arith.cmpi ne, %13, %c0_i32_9 : i32
    scf.if %14 {
      %c0_10 = arith.constant 0 : index
      %c0_11 = arith.constant 0 : index
      %15 = vector.load %arg5[%c0_10, %c0_11] : memref<8x128xf32, #tpu.memory_space<vmem>>, vector<8x128xf32>
      %c0_12 = arith.constant 0 : index
      %c0_13 = arith.constant 0 : index
      %16 = vector.load %arg4[%c0_12, %c0_13] : memref<8x128xf32, #tpu.memory_space<vmem>>, vector<8x128xf32>
      tpu.vector_store %arg4[%c0_12, %c0_13], %15 {strides = array<i32>} : memref<8x128xf32, #tpu.memory_space<vmem>>, vector<8x128xf32>,
    } else {
    }
    return
  }
  func.func @transform_0(%arg0: i32, %arg1: i32) -> (i32, i32) {
    %c1_i32 = arith.constant 1 : i32
    %0 = arith.muli %arg0, %c1_i32 : i32
    %1 = arith.addi %0, %arg1 : i32
    %c0_i32 = arith.constant 0 : i32
    %2 = arith.minsi %1, %c0_i32 : i32
    %c0_i32_0 = arith.constant 0 : i32
    %c0_i32_1 = arith.constant 0 : i32
    return %2, %c0_i32_0 : i32, i32
  }
  func.func @transform_1(%arg0: i32, %arg1: i32) -> (i32, i32) {
    %c1_i32 = arith.constant 1 : i32
    %0 = arith.muli %arg0, %c1_i32 : i32
    %1 = arith.addi %0, %arg1 : i32
    %c0_i32 = arith.constant 0 : i32
    %2 = arith.minsi %1, %c0_i32 : i32
    %c0_i32_0 = arith.constant 0 : i32
    %c0_i32_1 = arith.constant 0 : i32
    return %2, %c0_i32_0 : i32, i32
  }
  func.func @transform_2(%arg0: i32, %arg1: i32) -> (i32, i32) {
    %c0_i32 = arith.constant 0 : i32
    %c0_i32_0 = arith.constant 0 : i32
    return %arg0, %c0_i32 : i32, i32
  }
}

</mosaic_0001>

<bundles_post_ra>
// kernel: pixelwise_loss_l1.1
= control target key start
LH: loop header
LB: loop body
LE: loop exit
PB: predicated region body
PF: predicated region fallthrough
CT: control target
= control target key end

     0   :  { %s473_s0 = inlined_call_operand.vmem [shape: f32[256,128], index: 0, kind: input, shape index: {}]   ;;  %s474_s1 = inlined_call_operand.vmem [shape: f32[256,128], index: 1, kind: input, shape index: {}]   ;;  %s475_s2 = inlined_call_operand.vmem [shape: f32[8,128], index: 2, kind: output, shape index: {}]  }
   0x1   :  { %v80_v0 = vld [vmem:[%s473_s0] sm:$0xff]  ;;  %v81_v1 = vld [vmem:[%s473_s0 + $0x8] sm:$0xff]  ;;  %v82_v4 = vld [vmem:[%s473_s0 + $0x10] sm:$0xff] }
   0x2   :  { %v112_v2 = vld [vmem:[%s474_s1] sm:$0xff]  ;;  %v113_v3 = vld [vmem:[%s474_s1 + $0x8] sm:$0xff]  ;;  %v114_v5 = vld [vmem:[%s474_s1 + $0x10] sm:$0xff] }
   0x3   :  { %v144_v6 = vsub.f32 %v80_v0, %v112_v2  ;;  %v145_v7 = vsub.f32 %v81_v1, %v113_v3  ;;  %v83_v8 = vld [vmem:[%s473_s0 + $0x18] sm:$0xff]  ;;  %v146_v10 = vsub.f32 %v82_v4, %v114_v5  ;;  %v84_v11 = vld [vmem:[%s473_s0 + $0x20] sm:$0xff]  ;;  %v85_v16 = vld [vmem:[%s473_s0 + $0x28] sm:$0xff] }
   0x4   :  { %v115_v9 = vld [vmem:[%s474_s1 + $0x18] sm:$0xff]  ;;  %v116_v12 = vld [vmem:[%s474_s1 + $0x20] sm:$0xff]  ;;  %v117_v17 = vld [vmem:[%s474_s1 + $0x28] sm:$0xff] }
   0x5   :  { %v147_v13 = vsub.f32 %v83_v8, %v115_v9  ;;  %v176_v14 = vand.u32 2147483647, %v144_v6  ;;  %v177_v15 = vand.u32 2147483647, %v145_v7  ;;  %v148_v18 = vsub.f32 %v84_v11, %v116_v12  ;;  %v86_v20 = vld [vmem:[%s473_s0 + $0x30] sm:$0xff]  ;;  %v87_v25 = vld [vmem:[%s473_s0 + $0x38] sm:$0xff] }
   0x6   :  { %v178_v19 = vand.u32 2147483647, %v146_v10  ;;  %v118_v21 = vld [vmem:[%s474_s1 + $0x30] sm:$0xff]  ;;  %v149_v22 = vsub.f32 %v85_v16, %v117_v17  ;;  %v119_v26 = vld [vmem:[%s474_s1 + $0x38] sm:$0xff]  ;;  %v88_v30 = vld [vmem:[%s473_s0 + $0x40] sm:$0xff] }
   0x7   :  { %v179_v23 = vand.u32 2147483647, %v147_v13  ;;  %v209_v24 = vadd.f32 %v177_v15, %v176_v14  ;;  %v150_v27 = vsub.f32 %v86_v20, %v118_v21  ;;  %v180_v28 = vand.u32 2147483647, %v148_v18  ;;  %v120_v31 = vld [vmem:[%s474_s1 + $0x40] sm:$0xff]  ;;  %v89_v35 = vld [vmem:[%s473_s0 + $0x48] sm:$0xff] }
   0x8   :  { %v151_v32 = vsub.f32 %v87_v25, %v119_v26  ;;  %v181_v33 = vand.u32 2147483647, %v149_v22  ;;  %v121_v36 = vld [vmem:[%s474_s1 + $0x48] sm:$0xff]  ;;  %v152_v37 = vsub.f32 %v88_v30, %v120_v31  ;;  %v90_v40 = vld [vmem:[%s473_s0 + $0x50] sm:$0xff]  ;;  %v91_v45 = vld [vmem:[%s473_s0 + $0x58] sm:$0xff] }
   0x9   :  { %v210_v29 = vadd.f32 %v209_v24, %v178_v19  ;;  %v182_v38 = vand.u32 2147483647, %v150_v27  ;;  %v122_v41 = vld [vmem:[%s474_s1 + $0x50] sm:$0xff]  ;;  %v153_v42 = vsub.f32 %v89_v35, %v121_v36  ;;  %v123_v46 = vld [vmem:[%s474_s1 + $0x58] sm:$0xff]  ;;  %v92_v50 = vld [vmem:[%s473_s0 + $0x60] sm:$0xff] }
   0xa   :  { %v183_v43 = vand.u32 2147483647, %v151_v32  ;;  %v154_v47 = vsub.f32 %v90_v40, %v122_v41  ;;  %v184_v48 = vand.u32 2147483647, %v152_v37  ;;  %v124_v51 = vld [vmem:[%s474_s1 + $0x60] sm:$0xff]  ;;  %v155_v52 = vsub.f32 %v91_v45, %v123_v46  ;;  %v93_v55 = vld [vmem:[%s473_s0 + $0x68] sm:$0xff] }
   0xb   :  { %v211_v34 = vadd.f32 %v210_v29, %v179_v23  ;;  %v185_v53 = vand.u32 2147483647, %v153_v42  ;;  %v125_v56 = vld [vmem:[%s474_s1 + $0x68] sm:$0xff]  ;;  %v156_v57 = vsub.f32 %v92_v50, %v124_v51  ;;  %v94_v60 = vld [vmem:[%s473_s0 + $0x70] sm:$0xff]  ;;  %v95_v1 = vld [vmem:[%s473_s0 + $0x78] sm:$0xff] }
   0xc   :  { %v186_v58 = vand.u32 2147483647, %v154_v47  ;;  %v126_v61 = vld [vmem:[%s474_s1 + $0x70] sm:$0xff]  ;;  %v157_v62 = vsub.f32 %v93_v55, %v125_v56  ;;  %v187_v63 = vand.u32 2147483647, %v155_v52  ;;  %v127_v2 = vld [vmem:[%s474_s1 + $0x78] sm:$0xff] }
   0xd   :  { %v212_v39 = vadd.f32 %v211_v34, %v180_v28  ;;  %v158_v3 = vsub.f32 %v94_v60, %v126_v61  ;;  %v188_v4 = vand.u32 2147483647, %v156_v57  ;;  %v96_v6 = vld [vmem:[%s473_s0 + $0x80] sm:$0xff]  ;;  %v159_v8 = vsub.f32 %v95_v1, %v127_v2  ;;  %v97_v11 = vld [vmem:[%s473_s0 + $0x88] sm:$0xff]  ;;  %v98_v16 = vld [vmem:[%s473_s0 + $0x90] sm:$0xff] }
   0xe   :  { %v128_v7 = vld [vmem:[%s474_s1 + $0x80] sm:$0xff]  ;;  %v189_v9 = vand.u32 2147483647, %v157_v62  ;;  %v129_v12 = vld [vmem:[%s474_s1 + $0x88] sm:$0xff]  ;;  %v130_v17 = vld [vmem:[%s474_s1 + $0x90] sm:$0xff] }
   0xf   :  { %v213_v44 = vadd.f32 %v212_v39, %v181_v33  ;;  %v160_v13 = vsub.f32 %v96_v6, %v128_v7  ;;  %v190_v14 = vand.u32 2147483647, %v158_v3  ;;  %v161_v18 = vsub.f32 %v97_v11, %v129_v12  ;;  %v99_v21 = vld [vmem:[%s473_s0 + $0x98] sm:$0xff]  ;;  %v100_v26 = vld [vmem:[%s473_s0 + $0xa0] sm:$0xff]  ;;  %v101_v31 = vld [vmem:[%s473_s0 + $0xa8] sm:$0xff] }
  0x10   :  { %v191_v19 = vand.u32 2147483647, %v159_v8  ;;  %v131_v22 = vld [vmem:[%s474_s1 + $0x98] sm:$0xff]  ;;  %v162_v23 = vsub.f32 %v98_v16, %v130_v17  ;;  %v132_v27 = vld [vmem:[%s474_s1 + $0xa0] sm:$0xff]  ;;  %v133_v32 = vld [vmem:[%s474_s1 + $0xa8] sm:$0xff] }
  0x11   :  { %v214_v49 = vadd.f32 %v213_v44, %v182_v38  ;;  %v192_v24 = vand.u32 2147483647, %v160_v13  ;;  %v163_v28 = vsub.f32 %v99_v21, %v131_v22  ;;  %v193_v29 = vand.u32 2147483647, %v161_v18  ;;  %v102_v36 = vld [vmem:[%s473_s0 + $0xb0] sm:$0xff]  ;;  %v103_v41 = vld [vmem:[%s473_s0 + $0xb8] sm:$0xff] }
  0x12   :  { %v164_v33 = vsub.f32 %v100_v26, %v132_v27  ;;  %v194_v34 = vand.u32 2147483647, %v162_v23  ;;  %v134_v37 = vld [vmem:[%s474_s1 + $0xb0] sm:$0xff]  ;;  %v165_v38 = vsub.f32 %v101_v31, %v133_v32  ;;  %v135_v42 = vld [vmem:[%s474_s1 + $0xb8] sm:$0xff]  ;;  %v104_v46 = vld [vmem:[%s473_s0 + $0xc0] sm:$0xff] }
  0x13   :  { %v215_v54 = vadd.f32 %v214_v49, %v183_v43  ;;  %v195_v39 = vand.u32 2147483647, %v163_v28  ;;  %v166_v43 = vsub.f32 %v102_v36, %v134_v37  ;;  %v136_v47 = vld [vmem:[%s474_s1 + $0xc0] sm:$0xff]  ;;  %v105_v51 = vld [vmem:[%s473_s0 + $0xc8] sm:$0xff]  ;;  %v106_v56 = vld [vmem:[%s473_s0 + $0xd0] sm:$0xff] }
  0x14   :  { %v196_v44 = vand.u32 2147483647, %v164_v33  ;;  %v197_v49 = vand.u32 2147483647, %v165_v38  ;;  %v137_v52 = vld [vmem:[%s474_s1 + $0xc8] sm:$0xff]  ;;  %v138_v57 = vld [vmem:[%s474_s1 + $0xd0] sm:$0xff] }
  0x15   :  { %v216_v59 = vadd.f32 %v215_v54, %v184_v48  ;;  %v167_v48 = vsub.f32 %v103_v41, %v135_v42  ;;  %v198_v54 = vand.u32 2147483647, %v166_v43  ;;  %v107_v61 = vld [vmem:[%s473_s0 + $0xd8] sm:$0xff]  ;;  %v108_v2 = vld [vmem:[%s473_s0 + $0xe0] sm:$0xff]  ;;  %v109_v7 = vld [vmem:[%s473_s0 + $0xe8] sm:$0xff] }
  0x16   :  { %v139_v62 = vld [vmem:[%s474_s1 + $0xd8] sm:$0xff]  ;;  %v140_v3 = vld [vmem:[%s474_s1 + $0xe0] sm:$0xff]  ;;  %v141_v8 = vld [vmem:[%s474_s1 + $0xe8] sm:$0xff] }
  0x17   :  { %v217_v0 = vadd.f32 %v216_v59, %v185_v53  ;;  %v168_v53 = vsub.f32 %v104_v46, %v136_v47  ;;  %v199_v59 = vand.u32 2147483647, %v167_v48  ;;  %v110_v12 = vld [vmem:[%s473_s0 + $0xf0] sm:$0xff]  ;;  %v111_v17 = vld [vmem:[%s473_s0 + $0xf8] sm:$0xff] }
  0x18   :  { %v142_v13 = vld [vmem:[%s474_s1 + $0xf0] sm:$0xff]  ;;  %v143_v18 = vld [vmem:[%s474_s1 + $0xf8] sm:$0xff] }
  0x19   :  { %v218_v5 = vadd.f32 %v217_v0, %v186_v58  ;;  %v169_v58 = vsub.f32 %v105_v51, %v137_v52  ;;  %v200_v0 = vand.u32 2147483647, %v168_v53  ;;  %v175_v22 = vsub.f32 %v111_v17, %v143_v18 }
  0x1b   :  { %v219_v10 = vadd.f32 %v218_v5, %v187_v63  ;;  %v170_v63 = vsub.f32 %v106_v56, %v138_v57  ;;  %v201_v5 = vand.u32 2147483647, %v169_v58  ;;  %v207_v27 = vand.u32 2147483647, %v175_v22 }
  0x1d   :  { %v220_v15 = vadd.f32 %v219_v10, %v188_v4  ;;  %v171_v4 = vsub.f32 %v107_v61, %v139_v62  ;;  %v202_v10 = vand.u32 2147483647, %v170_v63 }
  0x1f   :  { %v221_v20 = vadd.f32 %v220_v15, %v189_v9  ;;  %v172_v9 = vsub.f32 %v108_v2, %v140_v3  ;;  %v203_v15 = vand.u32 2147483647, %v171_v4 }
  0x21   :  { %v222_v25 = vadd.f32 %v221_v20, %v190_v14  ;;  %v173_v14 = vsub.f32 %v109_v7, %v141_v8  ;;  %v204_v20 = vand.u32 2147483647, %v172_v9 }
  0x23   :  { %v223_v30 = vadd.f32 %v222_v25, %v191_v19  ;;  %v174_v19 = vsub.f32 %v110_v12, %v142_v13  ;;  %v205_v23 = vand.u32 2147483647, %v173_v14 }
  0x25   :  { %v224_v35 = vadd.f32 %v223_v30, %v192_v24  ;;  %v206_v25 = vand.u32 2147483647, %v174_v19 }
  0x27   :  { %v225_v40 = vadd.f32 %v224_v35, %v193_v29 }
  0x29   :  { %v226_v45 = vadd.f32 %v225_v40, %v194_v34 }
  0x2b   :  { %v227_v50 = vadd.f32 %v226_v45, %v195_v39 }
  0x2d   :  { %v228_v55 = vadd.f32 %v227_v50, %v196_v44 }
  0x2f   :  { %v229_v60 = vadd.f32 %v228_v55, %v197_v49 }
  0x31   :  { %v230_v1 = vadd.f32 %v229_v60, %v198_v54 }
  0x33   :  { %v231_v6 = vadd.f32 %v230_v1, %v199_v59 }
  0x35   :  { %v232_v11 = vadd.f32 %v231_v6, %v200_v0 }
  0x37   :  { %v233_v16 = vadd.f32 %v232_v11, %v201_v5 }
  0x39   :  { %v234_v21 = vadd.f32 %v233_v16, %v202_v10 }
  0x3b   :  { %v235_v24 = vadd.f32 %v234_v21, %v203_v15 }
  0x3d   :  { %v236_v26 = vadd.f32 %v235_v24, %v204_v20 }
  0x3f   :  { %v237_v28 = vadd.f32 %v236_v26, %v205_v23 }
  0x41   :  { %v238_v29 = vadd.f32 %v237_v28, %v206_v25 }
  0x43   :  { %v239_v30 = vadd.f32 %v238_v29, %v207_v27 }
  0x45   :  { %246 = vst [vmem:[%s475_s2] sm:$0xff] %v239_v30 }

</bundles_post_ra>
